<compile_context>
chip_gen: v6e
topology: v6e:2x2x1
jax: 0.10.0
libtpu: 0.0.40
codegen_flags: <defaults>
</compile_context>

<pallas_src>
import functools

import jax
import jax.numpy as jnp
from jax.experimental import pallas as pl
from jax.experimental.pallas import tpu as pltpu

# ---- module hyperparameters (FasterKANLayer defaults) -----------------------
INPUT_DIM = 32
OUTPUT_DIM = 16
GRID_MIN = -1.2
GRID_MAX = 0.2
NUM_GRIDS = 8
INV_DENOMINATOR = 0.5
SPLINE_INIT_SCALE = 0.667
LN_EPS = 1e-5


def fasterkan_kernel(x_ref, gamma_ref, beta_ref, gridrow_ref, w_ref, o_ref,
                     *, num_grids):
    # x_ref:       (TB, D)    VMEM  input tile
    # gamma_ref:   (1, D)     VMEM  LayerNorm weight * inv_denominator (pre-scaled)
    # beta_ref:    (1, D)     VMEM  LayerNorm bias   * inv_denominator (pre-scaled)
    # gridrow_ref: (1, G*D)   VMEM  grid[g]*inv_den repeated D times (g-major)
    # w_ref:       (G*D, O)   VMEM  rearranged SplineLinear weight (lane-dense)
    # o_ref:       (TB, O)    VMEM  output tile
    x = x_ref[...].astype(jnp.float32)                        # (TB, D)

    # LayerNorm over last dim (biased variance, as in torch.nn.LayerNorm).
    mean = jnp.mean(x, axis=-1, keepdims=True)
    xc = x - mean
    var = jnp.mean(xc * xc, axis=-1, keepdims=True)
    # gamma/beta are pre-scaled by inv_denominator in the wrapper, so xs is
    # already (LayerNorm(x)) * inv_denominator.
    xs = xc * jax.lax.rsqrt(var + LN_EPS) * gamma_ref[...] + beta_ref[...]  # (TB, D)

    # Lane-dense basis: replicate xs along lanes (g-major blocks of width D) and
    # subtract the pre-scaled grid row -> one (TB, G*D) slab of VPU/EUP work.
    xs_wide = jnp.concatenate([xs] * num_grids, axis=-1)      # (TB, G*D)
    t = jnp.tanh(xs_wide - gridrow_ref[...])                  # broadcast (1, G*D)
    basis = 1.0 - t * t                                       # (TB, G*D)

    # Single fused matmul, K = G*D (256): full MXU contraction, f32 accumulate.
    o_ref[...] = jnp.dot(basis.astype(w_ref.dtype), w_ref[...],
                         preferred_element_type=jnp.float32).astype(o_ref.dtype)


def _round_up(a, b):
    return pl.cdiv(a, b) * b


def fasterkan_layer(x, gamma, beta, grid_vals, inv_den, weight,
                    *, batch_tile=512, matmul_dtype=jnp.float32):
    """x: (B, D) f32; weight: (O, D*G) f32 (torch Linear layout). Returns (B, O)."""
    B, D = x.shape
    O, DG = weight.shape
    G = DG // D

    # Fold inv_denominator into the affine params and the grid constant.
    inv = inv_den[0]
    gamma_s = (gamma * inv).reshape(1, D).astype(jnp.float32)
    beta_s = (beta * inv).reshape(1, D).astype(jnp.float32)
    # grid_row[0, g*D + i] = grid[g] * inv_den   (g-major, matches basis layout)
    grid_row = jnp.repeat(grid_vals * inv, D).reshape(1, G * D).astype(jnp.float32)

    # w_flat[g*D + i, o] = weight[o, i*G + g]  (matches torch .view flatten order)
    w_flat = (weight.reshape(O, D, G).transpose(2, 1, 0)
              .reshape(G * D, O).astype(matmul_dtype))

    # Batch tiling: pad B so every block is (TB, D) with TB a multiple of 8.
    tb = min(batch_tile, _round_up(B, 8))
    B_pad = _round_up(B, tb)
    if B_pad != B:
        x = jnp.pad(x, ((0, B_pad - B), (0, 0)))

    kernel = functools.partial(fasterkan_kernel, num_grids=G)

    out = pl.pallas_call(
        kernel,
        out_shape=jax.ShapeDtypeStruct((B_pad, O), jnp.float32),
        grid=(B_pad // tb,),
        in_specs=[
            pl.BlockSpec((tb, D), lambda i: (i, 0)),          # x: tiled over batch
            pl.BlockSpec((1, D), lambda i: (0, 0)),           # gamma (resident)
            pl.BlockSpec((1, D), lambda i: (0, 0)),           # beta (resident)
            pl.BlockSpec((1, G * D), lambda i: (0, 0)),       # grid row (resident)
            pl.BlockSpec((G * D, O), lambda i: (0, 0)),       # weight (resident)
        ],
        out_specs=pl.BlockSpec((tb, O), lambda i: (i, 0)),
        compiler_params=pltpu.CompilerParams(
            dimension_semantics=("parallel",)),                # megacore on v7x
    )(x, gamma_s, beta_s, grid_row, w_flat)

    return out[:B]


def _reference(x, gamma, beta, grid_vals, inv_den, weight):
    mean = jnp.mean(x, axis=-1, keepdims=True)
    var = jnp.mean((x - mean) ** 2, axis=-1, keepdims=True)
    xn = (x - mean) / jnp.sqrt(var + LN_EPS) * gamma + beta
    diff = (xn[..., None] - grid_vals) * inv_den[0]
    basis = 1.0 - jnp.tanh(diff) ** 2
    flat = basis.reshape(x.shape[0], -1)
    return flat @ weight.T


if __name__ == "__main__":
    B = 8
    key = jax.random.PRNGKey(0)
    kx, kw = jax.random.split(key)

    x = jax.random.normal(kx, (B, INPUT_DIM), dtype=jnp.float32)

    # Parameters (deterministic init mirroring the module's __init__):
    gamma = jnp.ones((INPUT_DIM,), dtype=jnp.float32)          # LayerNorm weight
    beta = jnp.zeros((INPUT_DIM,), dtype=jnp.float32)          # LayerNorm bias
    grid_vals = jnp.linspace(GRID_MIN, GRID_MAX, NUM_GRIDS).astype(jnp.float32)
    inv_den = jnp.array([INV_DENOMINATOR], dtype=jnp.float32)
    # SplineLinear weight: trunc_normal_(std=spline_weight_init_scale), no bias.
    lo, hi = -2.0 / SPLINE_INIT_SCALE, 2.0 / SPLINE_INIT_SCALE
    weight = (jax.random.truncated_normal(kw, lo, hi,
                                          (OUTPUT_DIM, INPUT_DIM * NUM_GRIDS),
                                          dtype=jnp.float32)
              * SPLINE_INIT_SCALE)

    # f32 matmul by default; pass matmul_dtype=jnp.bfloat16 on v6e/v7x for the
    # 256x256 bf16 MXU path (loosen tolerance accordingly).
    out = fasterkan_layer(x, gamma, beta, grid_vals, inv_den, weight)
    out = jax.block_until_ready(out)

    ref = _reference(x, gamma, beta, grid_vals, inv_den, weight)
    assert out.shape == (B, OUTPUT_DIM)
    assert jnp.allclose(out, ref, atol=1e-4, rtol=1e-4), "mismatch vs reference"

    print("KERNEL_OK")
</pallas_src>

<mosaic_0001>
module attributes {stable_mosaic.version = 11 : i64} {
  func.func @fasterkan_kernel(%arg0: i32, %arg1: memref<8x32xf32, #tpu.memory_space<vmem>>, %arg2: memref<1x32xf32, #tpu.memory_space<vmem>>, %arg3: memref<1x32xf32, #tpu.memory_space<vmem>>, %arg4: memref<1x256xf32, #tpu.memory_space<vmem>>, %arg5: memref<256x16xf32, #tpu.memory_space<vmem>>, %arg6: memref<8x16xf32, #tpu.memory_space<vmem>>) attributes {dimension_semantics = [#tpu.dimension_semantics<parallel>], iteration_bounds = array<i64: 1>, scalar_prefetch = 0 : i64, scratch_operands = 0 : i64, tpu.core_type = #tpu.core_type<tc>, window_params = [{transform_indices = @transform_0, window_bounds = array<i64: 8, 32>}, {pipeline_mode = #tpu.pipeline_mode<synchronous>, transform_indices = @transform_1, window_bounds = array<i64: 1, 32>}, {pipeline_mode = #tpu.pipeline_mode<synchronous>, transform_indices = @transform_2, window_bounds = array<i64: 1, 32>}, {pipeline_mode = #tpu.pipeline_mode<synchronous>, transform_indices = @transform_3, window_bounds = array<i64: 1, 256>}, {pipeline_mode = #tpu.pipeline_mode<synchronous>, transform_indices = @transform_4, window_bounds = array<i64: 256, 16>}, {transform_indices = @transform_5, window_bounds = array<i64: 8, 16>}]} {
    %c0 = arith.constant 0 : index
    %c0_0 = arith.constant 0 : index
    %0 = vector.load %arg1[%c0, %c0_0] : memref<8x32xf32, #tpu.memory_space<vmem>>, vector<8x32xf32>
    %cst = arith.constant dense<0.000000e+00> : vector<8xf32>
    %1 = vector.multi_reduction <add>, %0, %cst [1] : vector<8x32xf32> to vector<8xf32>
    %2 = vector.shape_cast %1 : vector<8xf32> to vector<8x1xf32>
    %cst_1 = arith.constant 3.200000e+01 : f32
    %3 = vector.broadcast %cst_1 : f32 to vector<8x1xf32>
    %4 = arith.divf %2, %3 : vector<8x1xf32>
    %5 = vector.broadcast %4 : vector<8x1xf32> to vector<8x32xf32>
    %6 = arith.subf %0, %5 : vector<8x32xf32>
    %7 = arith.mulf %6, %6 : vector<8x32xf32>
    %cst_2 = arith.constant dense<0.000000e+00> : vector<8xf32>
    %8 = vector.multi_reduction <add>, %7, %cst_2 [1] : vector<8x32xf32> to vector<8xf32>
    %9 = vector.shape_cast %8 : vector<8xf32> to vector<8x1xf32>
    %cst_3 = arith.constant 3.200000e+01 : f32
    %10 = vector.broadcast %cst_3 : f32 to vector<8x1xf32>
    %11 = arith.divf %9, %10 : vector<8x1xf32>
    %cst_4 = arith.constant 9.99999974E-6 : f32
    %12 = vector.broadcast %cst_4 : f32 to vector<8x1xf32>
    %13 = arith.addf %11, %12 : vector<8x1xf32>
    %14 = math.rsqrt %13 : vector<8x1xf32>
    %15 = vector.broadcast %14 : vector<8x1xf32> to vector<8x32xf32>
    %16 = arith.mulf %6, %15 : vector<8x32xf32>
    %c0_5 = arith.constant 0 : index
    %c0_6 = arith.constant 0 : index
    %17 = vector.load %arg2[%c0_5, %c0_6] : memref<1x32xf32, #tpu.memory_space<vmem>>, vector<1x32xf32>
    %18 = vector.broadcast %17 : vector<1x32xf32> to vector<8x32xf32>
    %19 = arith.mulf %16, %18 : vector<8x32xf32>
    %c0_7 = arith.constant 0 : index
    %c0_8 = arith.constant 0 : index
    %20 = vector.load %arg3[%c0_7, %c0_8] : memref<1x32xf32, #tpu.memory_space<vmem>>, vector<1x32xf32>
    %21 = vector.broadcast %20 : vector<1x32xf32> to vector<8x32xf32>
    %22 = arith.addf %19, %21 : vector<8x32xf32>
    %23 = tpu.concatenate %22, %22, %22, %22, %22, %22, %22, %22 in 1 : vector<8x32xf32>, vector<8x32xf32>, vector<8x32xf32>, vector<8x32xf32>, vector<8x32xf32>, vector<8x32xf32>, vector<8x32xf32>, vector<8x32xf32> -> vector<8x256xf32>
    %c0_9 = arith.constant 0 : index
    %c0_10 = arith.constant 0 : index
    %24 = vector.load %arg4[%c0_9, %c0_10] : memref<1x256xf32, #tpu.memory_space<vmem>>, vector<1x256xf32>
    %25 = vector.broadcast %24 : vector<1x256xf32> to vector<8x256xf32>
    %26 = arith.subf %23, %25 : vector<8x256xf32>
    %27 = math.tanh %26 : vector<8x256xf32>
    %28 = arith.mulf %27, %27 : vector<8x256xf32>
    %cst_11 = arith.constant 1.000000e+00 : f32
    %29 = vector.broadcast %cst_11 : f32 to vector<8x256xf32>
    %30 = arith.subf %29, %28 : vector<8x256xf32>
    %c0_12 = arith.constant 0 : index
    %c0_13 = arith.constant 0 : index
    %31 = vector.load %arg5[%c0_12, %c0_13] : memref<256x16xf32, #tpu.memory_space<vmem>>, vector<256x16xf32>
    %cst_14 = arith.constant dense<0.000000e+00> : vector<8x16xf32>
    %32 = tpu.matmul %30, %31, %cst_14 {dimension_numbers = #tpu.dot_dimension_numbers<[1], [0], [0], [1], [0, 0, 1, 1], [], []>} : vector<8x256xf32>, vector<256x16xf32>, vector<8x16xf32> -> vector<8x16xf32>
    %c0_15 = arith.constant 0 : index
    %c0_16 = arith.constant 0 : index
    %33 = vector.load %arg6[%c0_15, %c0_16] : memref<8x16xf32, #tpu.memory_space<vmem>>, vector<8x16xf32>
    tpu.vector_store %arg6[%c0_15, %c0_16], %32 {strides = array<i32>} : memref<8x16xf32, #tpu.memory_space<vmem>>, vector<8x16xf32>,
    return
  }
  func.func @transform_0(%arg0: i32) -> (i32, i32) {
    %c0_i32 = arith.constant 0 : i32
    %c0_i32_0 = arith.constant 0 : i32
    return %arg0, %c0_i32 : i32, i32
  }
  func.func @transform_1(%arg0: i32) -> (i32, i32) {
    %c0_i32 = arith.constant 0 : i32
    %c0_i32_0 = arith.constant 0 : i32
    %c0_i32_1 = arith.constant 0 : i32
    return %c0_i32, %c0_i32_0 : i32, i32
  }
  func.func @transform_2(%arg0: i32) -> (i32, i32) {
    %c0_i32 = arith.constant 0 : i32
    %c0_i32_0 = arith.constant 0 : i32
    %c0_i32_1 = arith.constant 0 : i32
    return %c0_i32, %c0_i32_0 : i32, i32
  }
  func.func @transform_3(%arg0: i32) -> (i32, i32) {
    %c0_i32 = arith.constant 0 : i32
    %c0_i32_0 = arith.constant 0 : i32
    %c0_i32_1 = arith.constant 0 : i32
    return %c0_i32, %c0_i32_0 : i32, i32
  }
  func.func @transform_4(%arg0: i32) -> (i32, i32) {
    %c0_i32 = arith.constant 0 : i32
    %c0_i32_0 = arith.constant 0 : i32
    %c0_i32_1 = arith.constant 0 : i32
    return %c0_i32, %c0_i32_0 : i32, i32
  }
  func.func @transform_5(%arg0: i32) -> (i32, i32) {
    %c0_i32 = arith.constant 0 : i32
    %c0_i32_0 = arith.constant 0 : i32
    return %arg0, %c0_i32 : i32, i32
  }
}

</mosaic_0001>

<bundles_post_ra>
// kernel: tpu_custom_call.1
= control target key start
LH: loop header
LB: loop body
LE: loop exit
PB: predicated region body
PF: predicated region fallthrough
CT: control target
= control target key end

     0   :  { %vm22_vm0 = vcmask 261120   ;;  %s423_s0 = inlined_call_operand.vmem [shape: f32[8,32], index: 0, kind: input, shape index: {}]   ;;  %s424_s1 = inlined_call_operand.vmem [shape: f32[1,32], index: 1, kind: input, shape index: {}]   ;;  %s425_s2 = inlined_call_operand.vmem [shape: f32[1,32], index: 2, kind: input, shape index: {}]   ;;  %s426_s3 = inlined_call_operand.vmem [shape: f32[1,256], index: 3, kind: input, shape index: {}]   ;;  %s427_s4 = inlined_call_operand.vmem [shape: f32[256,16], index: 4, kind: input, shape index: {}]   ;;  %s428_s5 = inlined_call_operand.hbm [shape: f32[8,16], index: 5, kind: output, shape index: {}]  }
   0x1   :  { %v21_v0 = vld [vmem:[%s423_s0] sm:$0xff] }
   0x2   :  { %10 = vsyncpa [#allocation3], 0  ;;  %v23_v1 = vsel %vm22_vm0, %v21_v0, 0.0  ;;  %v119_v7 = vld [vmem:[%s427_s4 + $0xf8] sm:$0xff]  ;;  %v118_v9 = vld [vmem:[%s427_s4 + $0xf0] sm:$0xff]  ;;  %s275_s10 = smov 96   ;;  %v70_v48 = vlaneseq }
   0x3   :  { %24 = vadd.xlane.f32.xlu0 %v23_v1  ;;  %v103_v8 = vld [vmem:[%s427_s4 + $0x78] sm:$0xff]  ;;  %208 = vmatprep.subr.mxu0 %v119_v7  ;;  %v102_v10 = vld [vmem:[%s427_s4 + $0x70] sm:$0xff]  ;;  %v117_v11 = vld [vmem:[%s427_s4 + $0xe8] sm:$0xff]  ;;  %s276_s11 = smov 32   ;;  %s277_s20 = smov 64   ;;  %vm64_vm1 = vcmask 523264  }
   0x4   :  { %209 = vmatpush3.msra.mxu0 %v103_v8  ;;  %v101_v15 = vld [vmem:[%s427_s4 + $0x68] sm:$0xff]  ;;  %v116_v16 = vld [vmem:[%s427_s4 + $0xe0] sm:$0xff]  ;;  %v115_v18 = vld [vmem:[%s427_s4 + $0xd8] sm:$0xff]  ;;  %v71_v49 = vshrl.u32 %v70_v48, 7  ;;  %vm66_vm2 = vcmask 785408   ;;  %vm190_vm3 = vcmask 130048  }
   0x5   :  { %210 = vmatprep.subr.mxu0 %v118_v9  ;;  %v100_v17 = vld [vmem:[%s427_s4 + $0x60] sm:$0xff]  ;;  %v99_v19 = vld [vmem:[%s427_s4 + $0x58] sm:$0xff]  ;;  %v114_v20 = vld [vmem:[%s427_s4 + $0xd0] sm:$0xff] }
   0x6   :  { %211 = vmatpush3.msra.mxu0 %v102_v10  ;;  %v98_v21 = vld [vmem:[%s427_s4 + $0x50] sm:$0xff]  ;;  %v206_v23 = vld [vmem:[%s424_s1] ss:$0 sm:$0xff]  ;;  %v113_v24 = vld [vmem:[%s427_s4 + $0xc8] sm:$0xff]  ;;  %v72_v50 = vsub.s32 0, %v71_v49  ;;  %v76_v51 = vsub.s32 1, %v71_v49 }
   0x7   :  { %212 = vmatprep.subr.mxu0 %v117_v11  ;;  %v207_v26 = vld [vmem:[%s425_s2] ss:$0 sm:$0xff]  ;;  %v97_v27 = vld [vmem:[%s427_s4 + $0x48] sm:$0xff]  ;;  %v111_v30 = vld [vmem:[%s427_s4 + $0xb8] sm:$0xff] }
   0x8   :  { %213 = vmatpush3.msra.mxu0 %v101_v15  ;;  %v112_v28 = vld [vmem:[%s427_s4 + $0xc0] sm:$0xff]  ;;  %v95_v32 = vld [vmem:[%s427_s4 + $0x38] sm:$0xff]  ;;  %v110_v34 = vld [vmem:[%s427_s4 + $0xb0] sm:$0xff] }
   0x9   :  { %214 = vmatprep.subr.mxu0 %v116_v16  ;;  %v96_v29 = vld [vmem:[%s427_s4 + $0x40] sm:$0xff]  ;;  %v94_v35 = vld [vmem:[%s427_s4 + $0x30] sm:$0xff]  ;;  %v109_v36 = vld [vmem:[%s427_s4 + $0xa8] sm:$0xff] }
   0xa   :  { %215 = vmatpush3.msra.mxu0 %v100_v17  ;;  %v93_v37 = vld [vmem:[%s427_s4 + $0x28] sm:$0xff]  ;;  %v108_v38 = vld [vmem:[%s427_s4 + $0xa0] sm:$0xff]  ;;  %v107_v40 = vld [vmem:[%s427_s4 + $0x98] sm:$0xff] }
   0xb   :  { %216 = vmatprep.subr.mxu0 %v115_v18  ;;  %v92_v39 = vld [vmem:[%s427_s4 + $0x20] sm:$0xff]  ;;  %v91_v41 = vld [vmem:[%s427_s4 + $0x18] sm:$0xff]  ;;  %v106_v42 = vld [vmem:[%s427_s4 + $0x90] sm:$0xff] }
   0xc   :  { %217 = vmatpush3.msra.mxu0 %v99_v19  ;;  %v90_v43 = vld [vmem:[%s427_s4 + $0x10] sm:$0xff]  ;;  %v105_v44 = vld [vmem:[%s427_s4 + $0x88] sm:$0xff]  ;;  %v104_v46 = vld [vmem:[%s427_s4 + $0x80] sm:$0xff] }
   0xd   :  { %218 = vmatprep.subr.mxu0 %v114_v20  ;;  %v89_v45 = vld [vmem:[%s427_s4 + $0x8] sm:$0xff]  ;;  %v88_v47 = vld [vmem:[%s427_s4] sm:$0xff] }
   0xe   :  { %219 = vmatpush3.msra.mxu0 %v98_v21  ;;  %v68_v53 = vld [vmem:[%s426_s3] sm:$0x3]  ;;  %s278_s3 = smov [#allocation2]  }
   0xf   :  { %220 = vmatprep.subr.mxu0 %v113_v24  ;;  %v73_v54 = vrot.slane %v68_v53, %v72_v50  ;;  %v77_v55 = vrot.slane %v68_v53, %v76_v51  ;;  %s198_s4 = sshll.u32 %s278_s3, 4  ;;  %s199_s4 = int_to_ptr.vmem [resolvable:$true] %s198_s4 }
  0x10   :  { %221 = vmatpush3.msra.mxu0 %v97_v27  ;;  %p258_p1 = scmp.lt.s32.totalorder %s199_s4, %s199_s4 }
  0x11   :  { %222 = vmatprep.subr.mxu0 %v112_v28 }
  0x12   :  { %223 = vmatpush3.msra.mxu0 %v96_v29 }
  0x13   :  { %224 = vmatprep.subr.mxu0 %v111_v30 }
  0x14   :  { %225 = vmatpush3.msra.mxu0 %v95_v32 }
  0x15   :  { %226 = vmatprep.subr.mxu0 %v110_v34 }
  0x16   :  { %227 = vmatpush3.msra.mxu0 %v94_v35 }
  0x17   :  { %228 = vmatprep.subr.mxu0 %v109_v36 }
  0x18   :  { %229 = vmatpush3.msra.mxu0 %v93_v37 }
  0x19   :  { %230 = vmatprep.subr.mxu0 %v108_v38 }
  0x1a   :  { %231 = vmatpush3.msra.mxu0 %v92_v39 }
  0x1b   :  { %232 = vmatprep.subr.mxu0 %v107_v40 }
  0x1c   :  { %233 = vmatpush3.msra.mxu0 %v91_v41 }
  0x1d   :  { %234 = vmatprep.subr.mxu0 %v106_v42 }
  0x1e   :  { %235 = vmatpush3.msra.mxu0 %v90_v43 }
  0x1f   :  { %236 = vmatprep.subr.mxu0 %v105_v44 }
  0x20   :  { %237 = vmatpush3.msra.mxu0 %v89_v45 }
  0x21   :  { %238 = vmatprep.subr.mxu0 %v104_v46 }
  0x22   :  { %239 = vmatpush3.msra.mxu0 %v88_v47 }
  0x8c   :  { %v25_v2 = vpop.xlane.xlu0 %24 }
  0x8d   :  { %v27_v3 = vmul.f32 0.03125, %v25_v2 }
  0x8f   :  { %v28_v4 = vsub.f32 %v21_v0, %v27_v3 }
  0x91   :  { %v29_v5 = vmul.f32 %v28_v4, %v28_v4 }
  0x93   :  { %v30_v6 = vsel %vm22_vm0, %v29_v5, 0.0 }
  0x94   :  { %31 = vadd.xlane.f32.xlu0 %v30_v6 }
 0x11d   :  { %v32_v12 = vpop.xlane.xlu0 %31 }
 0x11e   :  { %v33_v13 = vmul.f32 0.03125, %v32_v12 }
 0x120   :  { %v34_v14 = vadd.f32 1e-05, %v33_v13 }
 0x122   :  { %247 = vrsqrt.f32 %v34_v14 }
 0x12f   :  { %v248_v22 = vpop.eup %247 }
 0x130   :  { %v36_v25 = vmul.f32 %v248_v22, %v28_v4 }
 0x132   :  { %v44_v31 = vmul.f32 %v206_v23, %v36_v25 }
 0x134   :  { %v52_v33 = vadd.f32 %v207_v26, %v44_v31 }
 0x136   :  { %60 = vrot.lane.b32.xlu0 %v52_v33, %s275_s10  ;;  %54 = vrot.lane.b32.xlu1 %v52_v33, %s276_s11  ;;  %s253_s11 = scalar_lea.vmem %s199_s4, 128 }
 0x137   :  { %p254_p0 = scmp.ne.s32.totalorder %s199_s4, %s253_s11  ;;  %p259_p2 = scmp.lt.s32.totalorder %s253_s11, %s253_s11 }
 0x139   :  { %p260_p3 = por %p259_p2, %p258_p1 }
 0x13a   :  { %57 = vrot.lane.b32.xlu1 %v52_v33, %s277_s20 }
 0x13b   :  { %p261_p4 = pnand %p260_p3, %p254_p0 }
 0x1a8   :  { %v55_v52 = vpop.permute.xlu1 %54  ;;  %v61_v58 = vpop.permute.xlu0 %60 }
 0x1a9   :  { %v63_v56 = vsel %vm22_vm0, %v52_v33, %v55_v52 }
 0x1ac   :  { %v58_v57 = vpop.permute.xlu1 %57 }
 0x1ad   :  { %v65_v59 = vsel %vm64_vm1, %v63_v56, %v58_v57 }
 0x1ae   :  { %v67_v60 = vsel %vm66_vm2, %v65_v59, %v61_v58 }
 0x1af   :  { %v80_v61 = vsub.f32 %v67_v60, %v73_v54  ;;  %v81_v62 = vsub.f32 %v67_v60, %v77_v55 }
 0x1b1   :  { %249 = vtanh.f32 %v80_v61 }
 0x1b2   :  { %251 = vtanh.f32 %v81_v62 }
 0x1be   :  { %v250_v63 = vpop.eup %249 }
 0x1bf   :  { %v252_v0 = vpop.eup %251  ;;  %v84_v1 = vmul.f32 %v250_v63, %v250_v63 }
 0x1c0   :  { %v85_v2 = vmul.f32 %v252_v0, %v252_v0 }
 0x1c1   :  { %v86_v3 = vsub.f32 1.0, %v84_v1 }
 0x1c2   :  { %v87_v4 = vsub.f32 1.0, %v85_v2 }
 0x1c4   :  { %184 = vmatprep.mubr.f32.mxu0 %v87_v4 }
 0x1c5   :  { %185 = vmatmul.mubr.f32.vlgmr.msra.gmra.mxu0 %v86_v3 }
 0x285   :  { %v240_v5 = vpop.f32.mrf.mxu0 }
 0x287   :  { %v241_v6 = vpop.f32.mrf.mxu0 }
 0x288   :  { %v242_v7 = vadd.f32 %v241_v6, %v240_v5 }
 0x28a   :  { %191 = vst.msk [vmem:[#allocation2] sm:$0xff] %vm190_vm3, %v242_v7 }
 0x28b   :  { %264 = shalt.err (!%p261_p4)
}
 0x28c   :  { %201 = dma.vmem_to_hbm [thread:$0]  %s199_s4, 128, %s428_s5, [#allocation3]  }
 0x28d   :  { %273 = dma.done.wait [#allocation3], 128  }
 0x28e   :  { %274 = vsyncadd [#allocation3], 4294967168 }
 0x28f   :  { %205 = vsyncpa [#allocation3], 1 }

</bundles_post_ra>
